<compile_context>
chip_gen: v7x
topology: tpu7x:2x2x1
jax: 0.10.0
libtpu: 0.0.40
codegen_flags: <defaults>
</compile_context>

<pallas_src>
import functools

import jax
import jax.numpy as jnp
from jax import lax
from jax.experimental import pallas as pl
from jax.experimental.pallas import tpu as pltpu


def _wce_kernel(logits_ref, targets_ref, weights_ref, loss_ref, *,
                label_smoothing: float, num_classes: int, batch: int,
                tile_b: int):
    i = pl.program_id(0)

    x = logits_ref[...]                                # [TB, C] native dtype
    t = targets_ref[...]                               # [TB, 1] int32
    w = weights_ref[...].astype(jnp.float32)           # [TB, 1]

    # torch.nan_to_num(nan=0.0, posinf=100.0, neginf=-100.0): replace exact
    # NaN / ±inf only (do NOT clip large finite logits).  Done in the native
    # dtype — bf16-native on v6e/v7x, exact vs. the f32 reference.
    dt = x.dtype
    x = jnp.where(jnp.isnan(x), jnp.asarray(0.0, dt), x)
    x = jnp.where(x == jnp.asarray(jnp.inf, dt), jnp.asarray(100.0, dt), x)
    x = jnp.where(x == jnp.asarray(-jnp.inf, dt), jnp.asarray(-100.0, dt), x)

    # Row max in the native dtype (comparisons only — exact), then one f32
    # upcast that feeds every remaining consumer.  No log-softmax block.
    m = jnp.max(x, axis=-1, keepdims=True).astype(jnp.float32)      # [TB, 1]
    xf = x.astype(jnp.float32)                                       # [TB, C]

    sum_e = jnp.sum(jnp.exp(xf - m), axis=-1, keepdims=True)        # [TB, 1]
    lse = m + jnp.log(sum_e)                                         # logsumexp

    # Gather x[i, t_i] via iota compare (one-hot select + lane reduce).
    col = lax.broadcasted_iota(jnp.int32, xf.shape, 1)               # [TB, C]
    x_t = jnp.sum(jnp.where(col == t, xf, 0.0), axis=-1, keepdims=True)

    eps = label_smoothing
    if eps:
        # (1-eps)·(lse - x_t) + (eps/C)·(C·lse - Σx)
        sum_x = jnp.sum(xf, axis=-1, keepdims=True)                  # [TB, 1]
        loss = lse - (1.0 - eps) * x_t - (eps / float(num_classes)) * sum_x
    else:
        loss = lse - x_t            # Σx pass skipped entirely when eps == 0

    loss = loss * w                 # per-sample weights

    # Mask rows past the true batch size (ragged final tile contains garbage).
    # NOTE: must stay a select (jnp.where) — garbage rows may carry NaN.
    row = i * tile_b + lax.broadcasted_iota(jnp.int32, loss.shape, 0)
    loss_ref[...] = jnp.where(row < batch, loss, 0.0)


def _choose_tile_b(batch: int, num_classes: int, itemsize: int) -> int:
    """Tile the batch so the per-step working set fits comfortably in VMEM.

    Working set per grid step ≈ 2·TB·C·itemsize (double-buffered native logits)
    + ~3·TB·C·4 (f32 upcast block + exp temporaries).  Budget ~16 MiB so it
    sits well under the 32 MiB scoped-VMEM limit requested below on every
    generation (v5e/v6e/v7x).
    """
    budget_bytes = 16 * 1024 * 1024
    per_row = num_classes * (2 * itemsize + 3 * 4)
    tb = budget_bytes // max(per_row, 1)
    tb = max(8, min(tb, 2048))
    tb -= tb % 8

    # v7x megacore: keep >= 4 tiles (and DMA/compute overlap) when the batch is
    # large enough; harmless on v5e/v6e.
    if batch > 32:
        quarter = -(-batch // 4)                    # cdiv(batch, 4)
        quarter = ((quarter + 7) // 8) * 8          # round up to sublane mult
        tb = min(tb, max(quarter, 8))

    if tb >= batch:
        return batch                                # single block covers batch
    return tb


def _sanitize_tile_b(tile_b: int, batch: int) -> int:
    """Round/clamp a user tile so BlockSpec (8,128) divisibility always holds."""
    tile_b = int(tile_b)
    if tile_b >= batch:
        return batch
    tile_b = max(8, (tile_b // 8) * 8)              # multiple of 8, >= 8
    return batch if tile_b >= batch else tile_b


def weighted_ce_loss(logits, targets, weights=None, *,
                     label_smoothing: float = 0.1,
                     reduction: str = "mean",
                     tile_b=None):
    """Pallas implementation of WeightedCELoss.forward."""
    B, C = logits.shape
    if weights is None:
        weights = jnp.ones((B,), dtype=jnp.float32)

    targets_2d = targets.astype(jnp.int32).reshape(B, 1)
    weights_2d = weights.astype(jnp.float32).reshape(B, 1)

    itemsize = jnp.dtype(logits.dtype).itemsize
    if tile_b is None:
        tile_b = _choose_tile_b(B, C, itemsize)
    else:
        tile_b = _sanitize_tile_b(tile_b, B)
    grid = (pl.cdiv(B, tile_b),)

    kernel = functools.partial(
        _wce_kernel,
        label_smoothing=float(label_smoothing),
        num_classes=C,
        batch=B,
        tile_b=tile_b,
    )

    cost = pl.CostEstimate(
        flops=15 * B * C,
        transcendentals=B * C,
        bytes_accessed=B * C * itemsize + 3 * B * 4,
    )

    per_sample = pl.pallas_call(
        kernel,
        out_shape=jax.ShapeDtypeStruct((B, 1), jnp.float32),
        grid=grid,
        in_specs=[
            pl.BlockSpec((tile_b, C), lambda i: (i, 0)),   # logits (native dtype)
            pl.BlockSpec((tile_b, 1), lambda i: (i, 0)),   # targets int32
            pl.BlockSpec((tile_b, 1), lambda i: (i, 0)),   # weights f32
        ],
        out_specs=pl.BlockSpec((tile_b, 1), lambda i: (i, 0)),
        compiler_params=pltpu.CompilerParams(
            dimension_semantics=("parallel",),             # megacore on v7x
            vmem_limit_bytes=32 * 1024 * 1024,             # raise v5e's 16 MiB default
        ),
        cost_estimate=cost,
    )(logits, targets_2d, weights_2d)

    per_sample = per_sample[:, 0]
    if reduction == "none":
        return per_sample
    if reduction == "sum":
        return jnp.sum(per_sample)
    if reduction == "mean":
        # Module semantics: loss.mean() over the batch (NOT weight-normalized).
        return jnp.sum(per_sample) / float(B)
    raise ValueError(f"Unsupported reduction method: {reduction}")


def _reference(logits, targets, weights, label_smoothing=0.1, reduction="mean"):
    """Pure-JAX reference mirroring F.cross_entropy + weighting + reduction."""
    x = logits.astype(jnp.float32)
    x = jnp.where(jnp.isnan(x), 0.0, x)
    x = jnp.where(x == jnp.inf, 100.0, x)
    x = jnp.where(x == -jnp.inf, -100.0, x)
    logp = jax.nn.log_softmax(x, axis=-1)
    nll = -jnp.take_along_axis(logp, targets.astype(jnp.int32)[:, None], axis=-1)[:, 0]
    smooth = -jnp.mean(logp, axis=-1)
    loss = (1.0 - label_smoothing) * nll + label_smoothing * smooth
    if weights is not None:
        loss = loss * weights.astype(jnp.float32)
    if reduction == "none":
        return loss
    if reduction == "sum":
        return jnp.sum(loss)
    return jnp.mean(loss)


if __name__ == "__main__":
    # --- Test 1: f32 logits with NaN/±inf sanitization (module-sized) --------
    k1, k2, k3 = jax.random.split(jax.random.PRNGKey(0), 3)
    B, C = 8, 32
    logits = jax.random.normal(k1, (B, C), dtype=jnp.float32) * 3.0
    logits = logits.at[0, 0].set(jnp.nan).at[1, 1].set(jnp.inf).at[2, 3].set(-jnp.inf)
    targets = jax.random.randint(k2, (B,), 0, C, dtype=jnp.int32)
    weights = jax.random.uniform(k3, (B,), dtype=jnp.float32) + 0.5

    out = jax.block_until_ready(weighted_ce_loss(logits, targets, weights))
    ref = _reference(logits, targets, weights)
    assert jnp.allclose(out, ref, rtol=1e-5, atol=1e-5), (out, ref)

    # --- Test 2: bf16 logits kept bf16 through DMA + sanitize, 2-tile grid ---
    k4, k5, k6 = jax.random.split(jax.random.PRNGKey(1), 3)
    B2, C2 = 32, 128
    logits2 = (jax.random.normal(k4, (B2, C2), dtype=jnp.float32) * 2.0).astype(jnp.bfloat16)
    targets2 = jax.random.randint(k5, (B2,), 0, C2, dtype=jnp.int32)
    weights2 = jax.random.uniform(k6, (B2,), dtype=jnp.float32)
    out2 = jax.block_until_ready(
        weighted_ce_loss(logits2, targets2, weights2, tile_b=16))
    ref2 = _reference(logits2, targets2, weights2)
    assert jnp.allclose(out2, ref2, rtol=1e-4, atol=1e-4), (out2, ref2)

    # --- Test 3: ragged final tile (B % TB != 0), 'sum' and 'none' -----------
    k7, k8, k9 = jax.random.split(jax.random.PRNGKey(2), 3)
    B3, C3 = 20, 32
    logits3 = jax.random.normal(k7, (B3, C3), dtype=jnp.float32)
    targets3 = jax.random.randint(k8, (B3,), 0, C3, dtype=jnp.int32)
    weights3 = jax.random.uniform(k9, (B3,), dtype=jnp.float32) + 0.5

    out3 = jax.block_until_ready(
        weighted_ce_loss(logits3, targets3, weights3, reduction="sum", tile_b=8))
    ref3 = _reference(logits3, targets3, weights3, reduction="sum")
    assert jnp.allclose(out3, ref3, rtol=1e-5, atol=1e-5), (out3, ref3)

    out4 = jax.block_until_ready(
        weighted_ce_loss(logits3, targets3, reduction="none", tile_b=8))
    ref4 = _reference(logits3, targets3, None, reduction="none")
    assert jnp.allclose(out4, ref4, rtol=1e-5, atol=1e-5), (out4, ref4)

    # --- Test 4: eps=0 fast path (Σx skipped) + non-multiple-of-8 user tile --
    out5 = jax.block_until_ready(
        weighted_ce_loss(logits3, targets3, weights3, label_smoothing=0.0,
                         reduction="mean", tile_b=10))   # clamped to 8 in wrapper
    ref5 = _reference(logits3, targets3, weights3, label_smoothing=0.0,
                      reduction="mean")
    assert jnp.allclose(out5, ref5, rtol=1e-5, atol=1e-5), (out5, ref5)

    print("KERNEL_OK")
</pallas_src>

<mosaic_0001>
module attributes {stable_mosaic.version = 11 : i64} {
  func.func @_wce_kernel(%arg0: i32, %arg1: memref<8x32xf32, #tpu.memory_space<vmem>>, %arg2: memref<8x1xi32, #tpu.memory_space<vmem>>, %arg3: memref<8x1xf32, #tpu.memory_space<vmem>>, %arg4: memref<8x1xf32, #tpu.memory_space<vmem>>) attributes {dimension_semantics = [#tpu.dimension_semantics<parallel>], iteration_bounds = array<i64: 1>, scalar_prefetch = 0 : i64, scratch_operands = 0 : i64, tpu.core_type = #tpu.core_type<tc>, window_params = [{transform_indices = @transform_0, window_bounds = array<i64: 8, 32>}, {transform_indices = @transform_1, window_bounds = array<i64: 8, 1>}, {transform_indices = @transform_2, window_bounds = array<i64: 8, 1>}, {transform_indices = @transform_3, window_bounds = array<i64: 8, 1>}]} {
    %c0 = arith.constant 0 : index
    %c0_0 = arith.constant 0 : index
    %0 = vector.load %arg1[%c0, %c0_0] : memref<8x32xf32, #tpu.memory_space<vmem>>, vector<8x32xf32>
    %c0_1 = arith.constant 0 : index
    %c0_2 = arith.constant 0 : index
    %1 = vector.load %arg2[%c0_1, %c0_2] : memref<8x1xi32, #tpu.memory_space<vmem>>, vector<8x1xi32>
    %c0_3 = arith.constant 0 : index
    %c0_4 = arith.constant 0 : index
    %2 = vector.load %arg3[%c0_3, %c0_4] : memref<8x1xf32, #tpu.memory_space<vmem>>, vector<8x1xf32>
    %3 = arith.cmpf one, %0, %0 : vector<8x32xf32>
    %cst = arith.constant 0.000000e+00 : f32
    %4 = vector.broadcast %cst : f32 to vector<8x32xf32>
    %5 = arith.select %3, %4, %0 : vector<8x32xi1>, vector<8x32xf32>
    %cst_5 = arith.constant 0x7F800000 : f32
    %6 = vector.broadcast %cst_5 : f32 to vector<8x32xf32>
    %7 = arith.cmpf oeq, %5, %6 : vector<8x32xf32>
    %cst_6 = arith.constant 1.000000e+02 : f32
    %8 = vector.broadcast %cst_6 : f32 to vector<8x32xf32>
    %9 = arith.select %7, %8, %5 : vector<8x32xi1>, vector<8x32xf32>
    %cst_7 = arith.constant 0xFF800000 : f32
    %10 = vector.broadcast %cst_7 : f32 to vector<8x32xf32>
    %11 = arith.cmpf oeq, %9, %10 : vector<8x32xf32>
    %cst_8 = arith.constant -1.000000e+02 : f32
    %12 = vector.broadcast %cst_8 : f32 to vector<8x32xf32>
    %13 = arith.select %11, %12, %9 : vector<8x32xi1>, vector<8x32xf32>
    %cst_9 = arith.constant dense<0xFF800000> : vector<8xf32>
    %14 = vector.multi_reduction <maximumf>, %13, %cst_9 [1] : vector<8x32xf32> to vector<8xf32>
    %15 = vector.shape_cast %14 : vector<8xf32> to vector<8x1xf32>
    %16 = vector.broadcast %15 : vector<8x1xf32> to vector<8x32xf32>
    %17 = arith.subf %13, %16 : vector<8x32xf32>
    %18 = math.exp %17 : vector<8x32xf32>
    %cst_10 = arith.constant dense<0.000000e+00> : vector<8xf32>
    %19 = vector.multi_reduction <add>, %18, %cst_10 [1] : vector<8x32xf32> to vector<8xf32>
    %20 = vector.shape_cast %19 : vector<8xf32> to vector<8x1xf32>
    %21 = math.log %20 : vector<8x1xf32>
    %22 = arith.addf %15, %21 : vector<8x1xf32>
    %23 = tpu.iota {dimensions = array<i32: 1>} : vector<8x32xi32>
    %24 = vector.broadcast %1 : vector<8x1xi32> to vector<8x32xi32>
    %25 = arith.cmpi eq, %23, %24 : vector<8x32xi32>
    %cst_11 = arith.constant 0.000000e+00 : f32
    %26 = vector.broadcast %cst_11 : f32 to vector<8x32xf32>
    %27 = arith.select %25, %13, %26 : vector<8x32xi1>, vector<8x32xf32>
    %cst_12 = arith.constant dense<0.000000e+00> : vector<8xf32>
    %28 = vector.multi_reduction <add>, %27, %cst_12 [1] : vector<8x32xf32> to vector<8xf32>
    %29 = vector.shape_cast %28 : vector<8xf32> to vector<8x1xf32>
    %cst_13 = arith.constant dense<0.000000e+00> : vector<8xf32>
    %30 = vector.multi_reduction <add>, %13, %cst_13 [1] : vector<8x32xf32> to vector<8xf32>
    %31 = vector.shape_cast %30 : vector<8xf32> to vector<8x1xf32>
    %cst_14 = arith.constant 0.899999976 : f32
    %32 = vector.broadcast %cst_14 : f32 to vector<8x1xf32>
    %33 = arith.mulf %32, %29 : vector<8x1xf32>
    %34 = arith.subf %22, %33 : vector<8x1xf32>
    %cst_15 = arith.constant 3.125000e-03 : f32
    %35 = vector.broadcast %cst_15 : f32 to vector<8x1xf32>
    %36 = arith.mulf %35, %31 : vector<8x1xf32>
    %37 = arith.subf %34, %36 : vector<8x1xf32>
    %38 = arith.mulf %37, %2 : vector<8x1xf32>
    %c8_i32 = arith.constant 8 : i32
    %39 = arith.muli %arg0, %c8_i32 : i32
    %40 = tpu.iota {dimensions = array<i32: 0>} : vector<8x1xi32>
    %41 = vector.broadcast %39 : i32 to vector<8x1xi32>
    %42 = arith.addi %41, %40 : vector<8x1xi32>
    %c8_i32_16 = arith.constant 8 : i32
    %43 = vector.broadcast %c8_i32_16 : i32 to vector<8x1xi32>
    %44 = arith.cmpi slt, %42, %43 : vector<8x1xi32>
    %cst_17 = arith.constant 0.000000e+00 : f32
    %45 = vector.broadcast %cst_17 : f32 to vector<8x1xf32>
    %46 = arith.select %44, %38, %45 : vector<8x1xi1>, vector<8x1xf32>
    %c0_18 = arith.constant 0 : index
    %c0_19 = arith.constant 0 : index
    %47 = vector.load %arg4[%c0_18, %c0_19] : memref<8x1xf32, #tpu.memory_space<vmem>>, vector<8x1xf32>
    tpu.vector_store %arg4[%c0_18, %c0_19], %46 {strides = array<i32>} : memref<8x1xf32, #tpu.memory_space<vmem>>, vector<8x1xf32>,
    return
  }
  func.func @transform_0(%arg0: i32) -> (i32, i32) {
    %c0_i32 = arith.constant 0 : i32
    %c0_i32_0 = arith.constant 0 : i32
    return %arg0, %c0_i32 : i32, i32
  }
  func.func @transform_1(%arg0: i32) -> (i32, i32) {
    %c0_i32 = arith.constant 0 : i32
    %c0_i32_0 = arith.constant 0 : i32
    return %arg0, %c0_i32 : i32, i32
  }
  func.func @transform_2(%arg0: i32) -> (i32, i32) {
    %c0_i32 = arith.constant 0 : i32
    %c0_i32_0 = arith.constant 0 : i32
    return %arg0, %c0_i32 : i32, i32
  }
  func.func @transform_3(%arg0: i32) -> (i32, i32) {
    %c0_i32 = arith.constant 0 : i32
    %c0_i32_0 = arith.constant 0 : i32
    return %arg0, %c0_i32 : i32, i32
  }
}

</mosaic_0001>

<bundles_post_ra>
// kernel: tpu_custom_call.1
= control target key start
LH: loop header
LB: loop body
LE: loop exit
PB: predicated region body
PF: predicated region fallthrough
CT: control target
= control target key end

     0   :  { %v73_v1 = vmov 0   ;;  %vm23_vm2 = vcmask 261120   ;;  %v36_v10 = vlaneseq  ;;  %vm61_vm5 = vcmask 7168   ;;  %s110_s0 = inlined_call_operand.vmem [shape: f32[8,32], index: 0, kind: input, shape index: {}]   ;;  %s111_s1 = inlined_call_operand.vmem [shape: s32[8,1], index: 1, kind: input, shape index: {}]   ;;  %s112_s2 = inlined_call_operand.vmem [shape: f32[8,1], index: 2, kind: input, shape index: {}]   ;;  %s113_s3 = inlined_call_operand.vmem [shape: f32[8,1], index: 3, kind: output, shape index: {}]  }
   0x1   :  { %v14_v0 = vld [vmem:[%s110_s0] sm:$0xff]  ;;  %68 = vset.pattern.permute.xlu0 %v73_v1 }
   0x2   :  { %vm17_vm0 = vcmp.ne.f32.partialorder %v14_v0, %v14_v0  ;;  %v15_v6 = vld [vmem:[%s111_s1] sm:$0xff]  ;;  %v37_v11 = vand.u32 127, %v36_v10 }
   0x3   :  { %v18_v2 = vsel %vm17_vm0, 0.0, %v14_v0  ;;  %v16_v27 = vld [vmem:[%s112_s2] sm:$0xff] }
   0x4   :  { %vm19_vm1 = vcmp.eq.f32.partialorder %v18_v2, inf }
   0x5   :  { %v20_v3 = vsel %vm19_vm1, 100.0, %v18_v2 }
   0x6   :  { %vm21_vm3 = vcmp.eq.f32.partialorder %v20_v3, -inf }
   0x7   :  { %v22_v4 = vsel %vm21_vm3, -100.0, %v20_v3 }
   0x8   :  { %v24_v5 = vsel %vm23_vm2, %v22_v4, -inf  ;;  %v46_v17 = vsel %vm23_vm2, %v22_v4, 0.0 }
   0x9   :  { %25 = vmax.xlane.f32.xlu0 %v24_v5 }
  0x1f   :  { %39 = vperm.xlu0 %68, %v15_v6  }
  0x96   :  { %v26_v7 = vpop.xlane.xlu0 %25 }
  0x97   :  { %v27_v8 = vsub.f32 %v22_v4, %v26_v7 }
  0x99   :  { %v28_v9 = vmul.f32 1.442695, %v27_v8 }
  0x9b   :  { %69 = vpow2.f32 %v28_v9 }
  0x9e   :  { %v40_v12 = vpop.permute.xlu0 %39 }
  0x9f   :  { %vm41_vm4 = vcmp.eq.s32.totalorder %v37_v11, %v40_v12 }
  0xa0   :  { %v42_v14 = vsel %vm41_vm4, %v22_v4, 0.0 }
  0xa1   :  { %v43_v16 = vsel %vm23_vm2, %v42_v14, 0.0 }
  0xa5   :  { %v70_v13 = vpop.eup %69 }
  0xa6   :  { %v30_v15 = vsel %vm23_vm2, %v70_v13, 0.0 }
  0xa7   :  { %31 = vadd.xlane.f32.xlu1 %v30_v15 }
  0xab   :  { %44 = vadd.xlane.f32.xlu1 %v43_v16 }
  0xaf   :  { %47 = vadd.xlane.f32.xlu1 %v46_v17 }
 0x134   :  { %v32_v18 = vpop.xlane.xlu1 %31 }
 0x135   :  { %71 = vlog2.f32 %v32_v18 }
 0x138   :  { %v45_v19 = vpop.xlane.xlu1 %44 }
 0x139   :  { %v49_v24 = vmul.f32 0.9, %v45_v19 }
 0x13c   :  { %v48_v21 = vpop.xlane.xlu1 %47 }
 0x13d   :  { %v51_v25 = vmul.f32 0.003125, %v48_v21 }
 0x13f   :  { %v72_v20 = vpop.eup %71 }
 0x140   :  { %v34_v22 = vmul.f32 0.6931472, %v72_v20 }
 0x142   :  { %v35_v23 = vadd.f32 %v34_v22, %v26_v7 }
 0x144   :  { %v50_v26 = vsub.f32 %v35_v23, %v49_v24 }
 0x146   :  { %v52_v28 = vsub.f32 %v50_v26, %v51_v25 }
 0x148   :  { %v53_v29 = vmul.f32 %v52_v28, %v16_v27 }
 0x14a   :  { %62 = vst.msk [vmem:[%s113_s3] sm:$0xff] %vm61_vm5, %v53_v29 }

</bundles_post_ra>
